<compile_context>
chip_gen: v7x
topology: tpu7x:2x2x1
jax: 0.10.0
libtpu: 0.0.40
codegen_flags: <defaults>
</compile_context>

<pallas_src>
import functools

import jax
import jax.numpy as jnp
from jax.experimental import pallas as pl
from jax.experimental.pallas import tpu as pltpu


def _round_up(x, m):
    return (x + m - 1) // m * m


def _context_encoder_kernel(num_linears, n_chunks, n_valid, valid_last,
                            pad_rows, has_sel, compute_dtype, *refs):
    """refs = [x, (sel,) w0, b0, ..., wL, bL, head_w, head_b, out, acc].

    x block: (R, Din) in compute_dtype, R = TB*TN rows.
    sel (only when TB>1): (TB, R) f32 row-group-sum matrix, padding mask baked in.
    Weights: (fan_in, fan_out_pad) compute_dtype; biases (1, fan_out_pad) f32.
    out block: (TB, Op2) f32 (packed [mu | logvar], lane-dense).
    acc scratch: (TB, Hp) f32 running row-group sums.
    """
    x_ref = refs[0]
    idx = 1
    sel_ref = None
    if has_sel:
        sel_ref = refs[idx]
        idx += 1
    layers = []
    for _ in range(num_linears):
        layers.append((refs[idx], refs[idx + 1]))
        idx += 2
    head_w_ref, head_b_ref = refs[idx], refs[idx + 1]
    out_ref = refs[idx + 2]
    acc_ref = refs[idx + 3]

    n = pl.program_id(1)
    n_last = n_chunks - 1

    # ---- MLP trunk: one full-width MXU matmul per Linear over all R rows ----
    h = x_ref[...]                                        # (R, Din) compute_dtype
    for li, (w_ref, b_ref) in enumerate(layers):
        z = jnp.dot(h, w_ref[...], preferred_element_type=jnp.float32) + b_ref[...]
        if li + 1 < num_linears:
            # cast before the ReLU: max runs at packed rate; result feeds next matmul
            h = jnp.maximum(z.astype(compute_dtype), 0.0)
        else:
            h = jnp.maximum(z, 0.0)                       # (R, Hp) f32 for the mean

    @pl.when(n == 0)
    def _init():
        acc_ref[...] = jnp.zeros_like(acc_ref)

    # ---- per-batch running sum over the context-set axis --------------------
    if has_sel:
        # Single-chunk multi-batch block: row-group sums on the MXU; the
        # N-padding mask is baked into `sel`, so no VPU mask work at all.
        acc_ref[...] += jnp.dot(sel_ref[...], h, preferred_element_type=jnp.float32)
    elif pad_rows == 0:
        acc_ref[...] += jnp.sum(h, axis=0, keepdims=True)
    elif n_chunks == 1:
        t = jax.lax.broadcasted_iota(jnp.int32, h.shape, 0)
        acc_ref[...] += jnp.sum(jnp.where(t < valid_last, h, 0.0),
                                axis=0, keepdims=True)
    else:
        # Padding lives only in the last chunk -> mask only there.
        @pl.when(n != n_last)
        def _acc_full():
            acc_ref[...] += jnp.sum(h, axis=0, keepdims=True)

        @pl.when(n == n_last)
        def _acc_masked():
            t = jax.lax.broadcasted_iota(jnp.int32, h.shape, 0)
            acc_ref[...] += jnp.sum(jnp.where(t < valid_last, h, 0.0),
                                    axis=0, keepdims=True)

    # ---- finalize: mean over N + fused [mu | logvar] head --------------------
    @pl.when(n == n_last)
    def _finalize():
        h_mean = acc_ref[...] * (1.0 / n_valid)           # (TB, Hp) f32
        out = jnp.dot(h_mean.astype(compute_dtype), head_w_ref[...],
                      preferred_element_type=jnp.float32) + head_b_ref[...]
        out_ref[...] = out                                # (TB, Op2), lane-dense


def context_encoder_forward(x, params, num_layers, *,
                            compute_dtype=jnp.bfloat16, tn_max=2048,
                            rows_target=1024):
    """x: (B, N, D_in). Returns (mu, logvar), each (B, output_size) float32."""
    B, N, Din = x.shape
    H = params["layers"][0][0].shape[1]
    O = params["mu_w"].shape[1]

    Hp = _round_up(H, 128)
    Op2 = _round_up(2 * O, 128)

    x_dtype = jnp.dtype(compute_dtype)
    sub = 8 if x_dtype.itemsize >= 4 else 8 * (4 // x_dtype.itemsize)  # 8 f32 / 16 bf16

    # Balanced context-set chunks; padding (< TN rows) confined to the last chunk.
    tn_max = max(sub, _round_up(tn_max, sub))
    n_chunks = -(-N // tn_max)
    TN = _round_up(-(-N // n_chunks), sub)
    N_pad = TN * n_chunks
    valid_last = N - (n_chunks - 1) * TN
    pad_rows = N_pad - N
    assert 0 <= pad_rows < TN  # invariant: all padding lives in the last chunk

    # Batch blocking: amortize per-grid-step overhead for small N. Large N
    # (multi-chunk) keeps TB=1 so x stays a simple contiguous reshape.
    if n_chunks == 1:
        TB = min(B, max(1, rows_target // TN))
        # v7x megacore: prefer >=2 parallel batch-blocks when each still has
        # a reasonable number of rows (neutral on v5e/v6e).
        if B >= 2 and -(-B // TB) < 2 and (B // 2) * TN >= 256:
            TB = -(-B // 2)
    else:
        TB = 1
    B_pad = _round_up(B, TB)
    nb = B_pad // TB
    R = TB * TN

    # x at its TRUE feature width and in compute_dtype -> minimal HBM bytes.
    xp = jnp.zeros((B_pad, N_pad, Din), compute_dtype)
    xp = xp.at[:B, :N, :].set(x.astype(compute_dtype))
    x4 = xp.reshape(nb, n_chunks, R, Din)   # contiguous: TB>1 only when n_chunks==1

    def pad2(a, r, c, dtype):
        out = jnp.zeros((r, c), dtype)
        return out.at[:a.shape[0], :a.shape[1]].set(a.astype(dtype))

    # Padded / cast weights (cast to compute_dtype once, here, not per step).
    padded_layers = []
    fan_in = Din                             # first weight keeps true Din rows
    for w, b in params["layers"]:
        padded_layers.append((pad2(w, fan_in, Hp, compute_dtype),
                              pad2(b, 1, Hp, jnp.float32)))
        fan_in = Hp

    # Fused [mu | logvar] head: one (Hp, Op2) matmul, packed lane-dense output.
    head_w = pad2(jnp.concatenate([params["mu_w"], params["lv_w"]], axis=1),
                  Hp, Op2, compute_dtype)
    head_b = pad2(jnp.concatenate([params["mu_b"], params["lv_b"]], axis=1),
                  1, Op2, jnp.float32)

    has_sel = TB > 1
    args = [x4]
    in_specs = [pl.BlockSpec((None, None, R, Din), lambda b, n: (b, n, 0, 0))]
    if has_sel:
        # (TB, R) row-group-sum matrix; zero columns for padded N rows.
        r_idx = jnp.arange(R)
        sel = ((r_idx[None, :] // TN == jnp.arange(TB)[:, None])
               & ((r_idx[None, :] % TN) < N)).astype(jnp.float32)
        args.append(sel)
        in_specs.append(pl.BlockSpec(sel.shape, lambda b, n: (0, 0)))
    for w, bb in padded_layers:
        args += [w, bb]
        in_specs += [pl.BlockSpec(w.shape, lambda b, n: (0, 0)),
                     pl.BlockSpec(bb.shape, lambda b, n: (0, 0))]
    args += [head_w, head_b]
    in_specs += [pl.BlockSpec(head_w.shape, lambda b, n: (0, 0)),
                 pl.BlockSpec(head_b.shape, lambda b, n: (0, 0))]

    out_shape = jax.ShapeDtypeStruct((nb, TB, Op2), jnp.float32)
    out_spec = pl.BlockSpec((None, TB, Op2), lambda b, n: (b, 0, 0))

    num_linears = num_layers + 1

    # Honest VMEM budget (double-buffered x tile, resident params, live f32
    # layer intermediates, accumulator, output block); capped at 32 MiB.
    param_bytes = sum(a.size * a.dtype.itemsize for a in args[1:])
    est = (2 * R * Din * x_dtype.itemsize
           + 2 * param_bytes
           + 2 * TB * Op2 * 4
           + TB * Hp * 4
           + 4 * R * Hp * 4)
    vmem_limit = int(min(32 << 20, max(4 << 20, 2 * est)))

    flops = (2 * B_pad * N_pad * (Din * Hp + num_layers * Hp * Hp)
             + 2 * B_pad * Hp * Op2)
    bytes_accessed = int(x4.size * x4.dtype.itemsize + param_bytes
                         + nb * TB * Op2 * 4)
    cost = pl.CostEstimate(flops=int(flops), transcendentals=0,
                           bytes_accessed=bytes_accessed)

    packed = pl.pallas_call(
        functools.partial(_context_encoder_kernel, num_linears, n_chunks, N,
                          valid_last, pad_rows, has_sel, compute_dtype),
        out_shape=out_shape,
        grid_spec=pltpu.PrefetchScalarGridSpec(
            num_scalar_prefetch=0,
            grid=(nb, n_chunks),
            in_specs=in_specs,
            out_specs=out_spec,
            scratch_shapes=[pltpu.VMEM((TB, Hp), jnp.float32)],
        ),
        compiler_params=pltpu.CompilerParams(
            dimension_semantics=("parallel", "arbitrary"),
            vmem_limit_bytes=vmem_limit,
        ),
        cost_estimate=cost,
    )(*args)

    packed = packed.reshape(B_pad, Op2)[:B]
    mu = packed[:, :O]
    logvar = packed[:, O:2 * O]
    return mu, logvar


def init_params(key, input_size, hidden_size, num_layers, output_size):
    """Deterministic synthetic params (PyTorch-style uniform(-1/sqrt(fan_in)))."""
    def linear(k, fan_in, fan_out):
        kw, kb = jax.random.split(k)
        bound = 1.0 / jnp.sqrt(fan_in)
        w = jax.random.uniform(kw, (fan_in, fan_out), jnp.float32, -bound, bound)
        b = jax.random.uniform(kb, (1, fan_out), jnp.float32, -bound, bound)
        return w, b

    keys = jax.random.split(key, num_layers + 3)
    layers = [linear(keys[0], input_size, hidden_size)]
    for i in range(num_layers):
        layers.append(linear(keys[1 + i], hidden_size, hidden_size))
    mu_w, mu_b = linear(keys[num_layers + 1], hidden_size, output_size)
    lv_w, lv_b = linear(keys[num_layers + 2], hidden_size, output_size)
    return {"layers": layers, "mu_w": mu_w, "mu_b": mu_b, "lv_w": lv_w, "lv_b": lv_b}


def reference_forward(x, params):
    """Pure-JAX reference for correctness check."""
    B, N, Din = x.shape
    h = x.reshape(B * N, Din)
    for w, b in params["layers"]:
        h = jnp.maximum(h @ w + b, 0.0)
    h = jnp.mean(h.reshape(B, N, -1), axis=1)
    return h @ params["mu_w"] + params["mu_b"], h @ params["lv_w"] + params["lv_b"]


if __name__ == "__main__":
    # Shapes consistent with the module's forward:
    # x: (batch=2, num_context=8, input_size=4), hidden=32, num_layers=2, output=4
    # TODO(synk): only act_type='ReLU' is implemented in-kernel (LeakyReLU/ELU/Sigmoid not wired up).
    B, N, INPUT_SIZE, HIDDEN, NUM_LAYERS, OUTPUT_SIZE = 2, 8, 4, 32, 2, 4

    key = jax.random.PRNGKey(0)
    k_x, k_p = jax.random.split(key)
    x = jax.random.normal(k_x, (B, N, INPUT_SIZE), jnp.float32)
    params = init_params(k_p, INPUT_SIZE, HIDDEN, NUM_LAYERS, OUTPUT_SIZE)

    mu_ref, lv_ref = reference_forward(x, params)

    # f32 MXU operands: bitwise-close to the reference.
    mu, logvar = context_encoder_forward(x, params, NUM_LAYERS,
                                         compute_dtype=jnp.float32)
    mu, logvar = jax.block_until_ready((mu, logvar))
    assert mu.shape == (B, OUTPUT_SIZE) and logvar.shape == (B, OUTPUT_SIZE)
    assert jnp.allclose(mu, mu_ref, atol=1e-5, rtol=1e-5)
    assert jnp.allclose(logvar, lv_ref, atol=1e-5, rtol=1e-5)

    # Default bf16 MXU operands (recommended on v5e/v6e/v7x), f32 accumulation.
    mu_bf, lv_bf = context_encoder_forward(x, params, NUM_LAYERS)
    mu_bf, lv_bf = jax.block_until_ready((mu_bf, lv_bf))
    assert jnp.allclose(mu_bf, mu_ref, atol=5e-2, rtol=5e-2)
    assert jnp.allclose(lv_bf, lv_ref, atol=5e-2, rtol=5e-2)

    print("KERNEL_OK")
</pallas_src>

<mosaic_0001>
module attributes {stable_mosaic.version = 11 : i64} {
  func.func @_context_encoder_kernel(%arg0: i32, %arg1: i32, %arg2: memref<1x1x16x4xf32, #tpu.memory_space<vmem>>, %arg3: memref<2x16xf32, #tpu.memory_space<vmem>>, %arg4: memref<4x128xf32, #tpu.memory_space<vmem>>, %arg5: memref<1x128xf32, #tpu.memory_space<vmem>>, %arg6: memref<128x128xf32, #tpu.memory_space<vmem>>, %arg7: memref<1x128xf32, #tpu.memory_space<vmem>>, %arg8: memref<128x128xf32, #tpu.memory_space<vmem>>, %arg9: memref<1x128xf32, #tpu.memory_space<vmem>>, %arg10: memref<128x128xf32, #tpu.memory_space<vmem>>, %arg11: memref<1x128xf32, #tpu.memory_space<vmem>>, %arg12: memref<1x2x128xf32, #tpu.memory_space<vmem>>, %arg13: memref<2x128xf32, #tpu.memory_space<vmem>>) attributes {dimension_semantics = [#tpu.dimension_semantics<parallel>, #tpu.dimension_semantics<arbitrary>], iteration_bounds = array<i64: 1, 1>, scalar_prefetch = 0 : i64, scratch_operands = 1 : i64, tpu.core_type = #tpu.core_type<tc>, window_params = [{transform_indices = @transform_0, window_bounds = array<i64: 1, 1, 16, 4>}, {pipeline_mode = #tpu.pipeline_mode<synchronous>, transform_indices = @transform_1, window_bounds = array<i64: 2, 16>}, {pipeline_mode = #tpu.pipeline_mode<synchronous>, transform_indices = @transform_2, window_bounds = array<i64: 4, 128>}, {pipeline_mode = #tpu.pipeline_mode<synchronous>, transform_indices = @transform_3, window_bounds = array<i64: 1, 128>}, {pipeline_mode = #tpu.pipeline_mode<synchronous>, transform_indices = @transform_4, window_bounds = array<i64: 128, 128>}, {pipeline_mode = #tpu.pipeline_mode<synchronous>, transform_indices = @transform_5, window_bounds = array<i64: 1, 128>}, {pipeline_mode = #tpu.pipeline_mode<synchronous>, transform_indices = @transform_6, window_bounds = array<i64: 128, 128>}, {pipeline_mode = #tpu.pipeline_mode<synchronous>, transform_indices = @transform_7, window_bounds = array<i64: 1, 128>}, {pipeline_mode = #tpu.pipeline_mode<synchronous>, transform_indices = @transform_8, window_bounds = array<i64: 128, 128>}, {pipeline_mode = #tpu.pipeline_mode<synchronous>, transform_indices = @transform_9, window_bounds = array<i64: 1, 128>}, {transform_indices = @transform_10, window_bounds = array<i64: 1, 2, 128>}]} {
    %c0 = arith.constant 0 : index
    %c0_0 = arith.constant 0 : index
    %c0_1 = arith.constant 0 : index
    %c0_2 = arith.constant 0 : index
    %0 = vector.load %arg2[%c0, %c0_0, %c0_1, %c0_2] : memref<1x1x16x4xf32, #tpu.memory_space<vmem>>, vector<1x1x16x4xf32>
    %1 = vector.shape_cast %0 : vector<1x1x16x4xf32> to vector<16x4xf32>
    %c0_3 = arith.constant 0 : index
    %c0_4 = arith.constant 0 : index
    %2 = vector.load %arg4[%c0_3, %c0_4] : memref<4x128xf32, #tpu.memory_space<vmem>>, vector<4x128xf32>
    %cst = arith.constant dense<0.000000e+00> : vector<16x128xf32>
    %3 = tpu.matmul %1, %2, %cst {dimension_numbers = #tpu.dot_dimension_numbers<[1], [0], [0], [1], [0, 0, 1, 1], [], []>} : vector<16x4xf32>, vector<4x128xf32>, vector<16x128xf32> -> vector<16x128xf32>
    %c0_5 = arith.constant 0 : index
    %c0_6 = arith.constant 0 : index
    %4 = vector.load %arg5[%c0_5, %c0_6] : memref<1x128xf32, #tpu.memory_space<vmem>>, vector<1x128xf32>
    %5 = vector.broadcast %4 : vector<1x128xf32> to vector<16x128xf32>
    %6 = arith.addf %3, %5 : vector<16x128xf32>
    %cst_7 = arith.constant 0.000000e+00 : f32
    %7 = vector.broadcast %cst_7 : f32 to vector<16x128xf32>
    %8 = arith.maximumf %6, %7 : vector<16x128xf32>
    %c0_8 = arith.constant 0 : index
    %c0_9 = arith.constant 0 : index
    %9 = vector.load %arg6[%c0_8, %c0_9] : memref<128x128xf32, #tpu.memory_space<vmem>>, vector<128x128xf32>
    %cst_10 = arith.constant dense<0.000000e+00> : vector<16x128xf32>
    %10 = tpu.matmul %8, %9, %cst_10 {dimension_numbers = #tpu.dot_dimension_numbers<[1], [0], [0], [1], [0, 0, 1, 1], [], []>} : vector<16x128xf32>, vector<128x128xf32>, vector<16x128xf32> -> vector<16x128xf32>
    %c0_11 = arith.constant 0 : index
    %c0_12 = arith.constant 0 : index
    %11 = vector.load %arg7[%c0_11, %c0_12] : memref<1x128xf32, #tpu.memory_space<vmem>>, vector<1x128xf32>
    %12 = vector.broadcast %11 : vector<1x128xf32> to vector<16x128xf32>
    %13 = arith.addf %10, %12 : vector<16x128xf32>
    %cst_13 = arith.constant 0.000000e+00 : f32
    %14 = vector.broadcast %cst_13 : f32 to vector<16x128xf32>
    %15 = arith.maximumf %13, %14 : vector<16x128xf32>
    %c0_14 = arith.constant 0 : index
    %c0_15 = arith.constant 0 : index
    %16 = vector.load %arg8[%c0_14, %c0_15] : memref<128x128xf32, #tpu.memory_space<vmem>>, vector<128x128xf32>
    %cst_16 = arith.constant dense<0.000000e+00> : vector<16x128xf32>
    %17 = tpu.matmul %15, %16, %cst_16 {dimension_numbers = #tpu.dot_dimension_numbers<[1], [0], [0], [1], [0, 0, 1, 1], [], []>} : vector<16x128xf32>, vector<128x128xf32>, vector<16x128xf32> -> vector<16x128xf32>
    %c0_17 = arith.constant 0 : index
    %c0_18 = arith.constant 0 : index
    %18 = vector.load %arg9[%c0_17, %c0_18] : memref<1x128xf32, #tpu.memory_space<vmem>>, vector<1x128xf32>
    %19 = vector.broadcast %18 : vector<1x128xf32> to vector<16x128xf32>
    %20 = arith.addf %17, %19 : vector<16x128xf32>
    %cst_19 = arith.constant 0.000000e+00 : f32
    %21 = vector.broadcast %cst_19 : f32 to vector<16x128xf32>
    %22 = arith.maximumf %20, %21 : vector<16x128xf32>
    %c0_i32 = arith.constant 0 : i32
    %23 = arith.cmpi eq, %arg1, %c0_i32 : i32
    %24 = arith.extui %23 : i1 to i32
    %c0_i32_20 = arith.constant 0 : i32
    %25 = arith.cmpi ne, %24, %c0_i32_20 : i32
    scf.if %25 {
      %cst_30 = arith.constant 0.000000e+00 : f32
      %34 = vector.broadcast %cst_30 : f32 to vector<2x128xf32>
      %c0_31 = arith.constant 0 : index
      %c0_32 = arith.constant 0 : index
      %35 = vector.load %arg13[%c0_31, %c0_32] : memref<2x128xf32, #tpu.memory_space<vmem>>, vector<2x128xf32>
      tpu.vector_store %arg13[%c0_31, %c0_32], %34 {strides = array<i32>} : memref<2x128xf32, #tpu.memory_space<vmem>>, vector<2x128xf32>,
    } else {
    }
    %c0_21 = arith.constant 0 : index
    %c0_22 = arith.constant 0 : index
    %26 = vector.load %arg13[%c0_21, %c0_22] : memref<2x128xf32, #tpu.memory_space<vmem>>, vector<2x128xf32>
    %c0_23 = arith.constant 0 : index
    %c0_24 = arith.constant 0 : index
    %27 = vector.load %arg3[%c0_23, %c0_24] : memref<2x16xf32, #tpu.memory_space<vmem>>, vector<2x16xf32>
    %cst_25 = arith.constant dense<0.000000e+00> : vector<2x128xf32>
    %28 = tpu.matmul %27, %22, %cst_25 {dimension_numbers = #tpu.dot_dimension_numbers<[1], [0], [0], [1], [0, 0, 1, 1], [], []>} : vector<2x16xf32>, vector<16x128xf32>, vector<2x128xf32> -> vector<2x128xf32>
    %29 = arith.addf %26, %28 : vector<2x128xf32>
    %c0_26 = arith.constant 0 : index
    %c0_27 = arith.constant 0 : index
    %30 = vector.load %arg13[%c0_26, %c0_27] : memref<2x128xf32, #tpu.memory_space<vmem>>, vector<2x128xf32>
    tpu.vector_store %arg13[%c0_26, %c0_27], %29 {strides = array<i32>} : memref<2x128xf32, #tpu.memory_space<vmem>>, vector<2x128xf32>,
    %c0_i32_28 = arith.constant 0 : i32
    %31 = arith.cmpi eq, %arg1, %c0_i32_28 : i32
    %32 = arith.extui %31 : i1 to i32
    %c0_i32_29 = arith.constant 0 : i32
    %33 = arith.cmpi ne, %32, %c0_i32_29 : i32
    scf.if %33 {
      %c0_30 = arith.constant 0 : index
      %c0_31 = arith.constant 0 : index
      %34 = vector.load %arg13[%c0_30, %c0_31] : memref<2x128xf32, #tpu.memory_space<vmem>>, vector<2x128xf32>
      %cst_32 = arith.constant 1.250000e-01 : f32
      %35 = vector.broadcast %cst_32 : f32 to vector<2x128xf32>
      %36 = arith.mulf %34, %35 : vector<2x128xf32>
      %c0_33 = arith.constant 0 : index
      %c0_34 = arith.constant 0 : index
      %37 = vector.load %arg10[%c0_33, %c0_34] : memref<128x128xf32, #tpu.memory_space<vmem>>, vector<128x128xf32>
      %cst_35 = arith.constant dense<0.000000e+00> : vector<2x128xf32>
      %38 = tpu.matmul %36, %37, %cst_35 {dimension_numbers = #tpu.dot_dimension_numbers<[1], [0], [0], [1], [0, 0, 1, 1], [], []>} : vector<2x128xf32>, vector<128x128xf32>, vector<2x128xf32> -> vector<2x128xf32>
      %c0_36 = arith.constant 0 : index
      %c0_37 = arith.constant 0 : index
      %39 = vector.load %arg11[%c0_36, %c0_37] : memref<1x128xf32, #tpu.memory_space<vmem>>, vector<1x128xf32>
      %40 = vector.broadcast %39 : vector<1x128xf32> to vector<2x128xf32>
      %41 = arith.addf %38, %40 : vector<2x128xf32>
      %c0_38 = arith.constant 0 : index
      %c0_39 = arith.constant 0 : index
      %c0_40 = arith.constant 0 : index
      %42 = vector.load %arg12[%c0_38, %c0_39, %c0_40] : memref<1x2x128xf32, #tpu.memory_space<vmem>>, vector<1x2x128xf32>
      %43 = vector.shape_cast %42 : vector<1x2x128xf32> to vector<2x128xf32>
      %44 = vector.shape_cast %41 : vector<2x128xf32> to vector<1x2x128xf32>
      tpu.vector_store %arg12[%c0_38, %c0_39, %c0_40], %44 {strides = array<i32>} : memref<1x2x128xf32, #tpu.memory_space<vmem>>, vector<1x2x128xf32>,
    } else {
    }
    return
  }
  func.func @transform_0(%arg0: i32, %arg1: i32) -> (i32, i32, i32, i32) {
    %c0_i32 = arith.constant 0 : i32
    %c0_i32_0 = arith.constant 0 : i32
    %c0_i32_1 = arith.constant 0 : i32
    return %arg0, %arg1, %c0_i32, %c0_i32_0 : i32, i32, i32, i32
  }
  func.func @transform_1(%arg0: i32, %arg1: i32) -> (i32, i32) {
    %c0_i32 = arith.constant 0 : i32
    %c0_i32_0 = arith.constant 0 : i32
    %c0_i32_1 = arith.constant 0 : i32
    return %c0_i32, %c0_i32_0 : i32, i32
  }
  func.func @transform_2(%arg0: i32, %arg1: i32) -> (i32, i32) {
    %c0_i32 = arith.constant 0 : i32
    %c0_i32_0 = arith.constant 0 : i32
    %c0_i32_1 = arith.constant 0 : i32
    return %c0_i32, %c0_i32_0 : i32, i32
  }
  func.func @transform_3(%arg0: i32, %arg1: i32) -> (i32, i32) {
    %c0_i32 = arith.constant 0 : i32
    %c0_i32_0 = arith.constant 0 : i32
    %c0_i32_1 = arith.constant 0 : i32
    return %c0_i32, %c0_i32_0 : i32, i32
  }
  func.func @transform_4(%arg0: i32, %arg1: i32) -> (i32, i32) {
    %c0_i32 = arith.constant 0 : i32
    %c0_i32_0 = arith.constant 0 : i32
    %c0_i32_1 = arith.constant 0 : i32
    return %c0_i32, %c0_i32_0 : i32, i32
  }
  func.func @transform_5(%arg0: i32, %arg1: i32) -> (i32, i32) {
    %c0_i32 = arith.constant 0 : i32
    %c0_i32_0 = arith.constant 0 : i32
    %c0_i32_1 = arith.constant 0 : i32
    return %c0_i32, %c0_i32_0 : i32, i32
  }
  func.func @transform_6(%arg0: i32, %arg1: i32) -> (i32, i32) {
    %c0_i32 = arith.constant 0 : i32
    %c0_i32_0 = arith.constant 0 : i32
    %c0_i32_1 = arith.constant 0 : i32
    return %c0_i32, %c0_i32_0 : i32, i32
  }
  func.func @transform_7(%arg0: i32, %arg1: i32) -> (i32, i32) {
    %c0_i32 = arith.constant 0 : i32
    %c0_i32_0 = arith.constant 0 : i32
    %c0_i32_1 = arith.constant 0 : i32
    return %c0_i32, %c0_i32_0 : i32, i32
  }
  func.func @transform_8(%arg0: i32, %arg1: i32) -> (i32, i32) {
    %c0_i32 = arith.constant 0 : i32
    %c0_i32_0 = arith.constant 0 : i32
    %c0_i32_1 = arith.constant 0 : i32
    return %c0_i32, %c0_i32_0 : i32, i32
  }
  func.func @transform_9(%arg0: i32, %arg1: i32) -> (i32, i32) {
    %c0_i32 = arith.constant 0 : i32
    %c0_i32_0 = arith.constant 0 : i32
    %c0_i32_1 = arith.constant 0 : i32
    return %c0_i32, %c0_i32_0 : i32, i32
  }
  func.func @transform_10(%arg0: i32, %arg1: i32) -> (i32, i32, i32) {
    %c0_i32 = arith.constant 0 : i32
    %c0_i32_0 = arith.constant 0 : i32
    %c0_i32_1 = arith.constant 0 : i32
    return %arg0, %c0_i32, %c0_i32_0 : i32, i32, i32
  }
}

</mosaic_0001>

<bundles_post_ra>
// kernel: tpu_custom_call.1
= control target key start
LH: loop header
LB: loop body
LE: loop exit
PB: predicated region body
PF: predicated region fallthrough
CT: control target
= control target key end

     0   :  { %15 = vsyncpa [#allocation4], 0  ;;  %s1103_s0 = inlined_call_operand.vmem [shape: f32[1,1,16,4], index: 0, kind: input, shape index: {}]   ;;  %s1104_s1 = inlined_call_operand.vmem [shape: f32[2,16], index: 1, kind: input, shape index: {}]   ;;  %s1105_s2 = inlined_call_operand.vmem [shape: f32[4,128], index: 2, kind: input, shape index: {}]   ;;  %s1106_s3 = inlined_call_operand.vmem [shape: f32[1,128], index: 3, kind: input, shape index: {}]   ;;  %s1107_s4 = inlined_call_operand.hbm [shape: f32[128,128], index: 4, kind: input, shape index: {}]   ;;  %s1108_s5 = inlined_call_operand.vmem [shape: f32[1,128], index: 5, kind: input, shape index: {}]   ;;  %s1109_s6 = inlined_call_operand.hbm [shape: f32[128,128], index: 6, kind: input, shape index: {}]   ;;  %s1110_s7 = inlined_call_operand.vmem [shape: f32[1,128], index: 7, kind: input, shape index: {}]   ;;  %s1111_s8 = inlined_call_operand.hbm [shape: f32[128,128], index: 8, kind: input, shape index: {}]   ;;  %s1112_s9 = inlined_call_operand.vmem [shape: f32[1,128], index: 9, kind: input, shape index: {}]   ;;  %s1113_s10 = inlined_call_operand.hbm [shape: f32[1,2,128], index: 10, kind: output, shape index: {}]  }
   0x1   :  { %16 = vsyncpa [#allocation7], 0 }
   0x2   :  { %17 = vsyncpa [#allocation5], 0  ;;  %s951_s13 = smov [#allocation6]   ;;  %s952_s15 = smov [#allocation3]  }
   0x3   :  { %s45_s14 = sshll.u32 %s951_s13, 4  ;;  %s31_s16 = sshll.u32 %s952_s15, 4  ;;  %s46_s14 = int_to_ptr.vmem [resolvable:$true] %s45_s14  ;;  %s1015_s16 = int_to_ptr.vmem [resolvable:$true] %s31_s16 }
   0x4   :  { %s857_s19 = scalar_lea.hbm %s1109_s6, 2048 }
   0x5   :  { %p858_p0 = scmp.ne.s32.totalorder %s1109_s6, %s857_s19  ;;  %p861_p1 = scmp.lt.u32.totalorder %s857_s19, %s1109_s6 }
   0x7   :  { %p863_p2 = pnand %p861_p1, %p858_p0 }
   0x9   :  { %866 = shalt.err (!%p863_p2)
}
   0xa   :  { %s867_s24 = scalar_lea.vmem %s46_s14, 2048  ;;  %p872_p4 = scmp.lt.s32.totalorder %s46_s14, %s46_s14 }
   0xb   :  { %p868_p3 = scmp.ne.s32.totalorder %s46_s14, %s867_s24  ;;  %p873_p5 = scmp.lt.s32.totalorder %s867_s24, %s867_s24 }
   0xd   :  { %p874_p6 = por %p873_p5, %p872_p4 }
   0xf   :  { %p875_p7 = pnand %p874_p6, %p868_p3 }
  0x11   :  { %878 = shalt.err (!%p875_p7)
}
  0x12   :  { %s953_s25 = smov 128   ;;  %s954_s26 = smov 8  }
  0x13   :  { %51 = dma.hbm_to_vmem [thread:$0]  %s1109_s6, 2048, %s46_s14, [#allocation7], %s953_s25, %s953_s25, %s954_s26  }
  0x14   :  { %s879_s11 = scalar_lea.hbm %s1107_s4, 2048 }
  0x15   :  { %p880_p8 = scmp.ne.s32.totalorder %s1107_s4, %s879_s11  ;;  %p883_p9 = scmp.lt.u32.totalorder %s879_s11, %s1107_s4 }
  0x17   :  { %p885_p10 = pnand %p883_p9, %p880_p8 }
  0x19   :  { %888 = shalt.err (!%p885_p10)
}
  0x1a   :  { %s889_s18 = scalar_lea.vmem %s1015_s16, 2048  ;;  %p894_p12 = scmp.lt.s32.totalorder %s1015_s16, %s1015_s16 }
  0x1b   :  { %p890_p11 = scmp.ne.s32.totalorder %s1015_s16, %s889_s18  ;;  %p895_p13 = scmp.lt.s32.totalorder %s889_s18, %s889_s18 }
  0x1d   :  { %p896_p0 = por %p895_p13, %p894_p12 }
  0x1f   :  { %p897_p1 = pnand %p896_p0, %p890_p11 }
  0x21   :  { %900 = shalt.err (!%p897_p1)
}
  0x22   :  { %37 = dma.hbm_to_vmem [thread:$0]  %s1107_s4, 2048, %s1015_s16, [#allocation4], %s953_s25, %s953_s25, %s954_s26  }
  0x23   :  { %s955_s19 = smov [#allocation8]   ;;  %s901_s23 = scalar_lea.hbm %s1111_s8, 2048 }
  0x24   :  { %s59_s20 = sshll.u32 %s955_s19, 4  ;;  %p902_p2 = scmp.ne.s32.totalorder %s1111_s8, %s901_s23  ;;  %s60_s20 = int_to_ptr.vmem [resolvable:$true] %s59_s20 }
  0x25   :  { %p905_p3 = scmp.lt.u32.totalorder %s901_s23, %s1111_s8 }
  0x27   :  { %p907_p4 = pnand %p905_p3, %p902_p2 }
  0x29   :  { %910 = shalt.err (!%p907_p4)
}
  0x2a   :  { %s911_s30 = scalar_lea.vmem %s60_s20, 2048  ;;  %p916_p6 = scmp.lt.s32.totalorder %s60_s20, %s60_s20 }
  0x2b   :  { %p912_p5 = scmp.ne.s32.totalorder %s60_s20, %s911_s30  ;;  %p917_p7 = scmp.lt.s32.totalorder %s911_s30, %s911_s30 }
  0x2d   :  { %p918_p8 = por %p917_p7, %p916_p6 }
  0x2f   :  { %p919_p9 = pnand %p918_p8, %p912_p5 }
  0x31   :  { %922 = shalt.err (!%p919_p9)
}
  0x32   :  { %65 = dma.hbm_to_vmem [thread:$0]  %s1111_s8, 2048, %s60_s20, [#allocation7], %s953_s25, %s953_s25, %s954_s26  }
  0x33   :  { %945 = dma.done.wait [#allocation4], 2048  }
  0x34   :  { %946 = vsyncadd [#allocation4], 4294965248 }
  0x35   :  { %947 = dma.done.wait [#allocation7], 4096  }
  0x36   :  { %948 = vsyncadd [#allocation7], 4294963200  ;;  %vm94_vm0 = vcmask 1043456   ;;  %vm87_vm1 = vcmask 31744   ;;  %v79_v0 = vld [vmem:[%s1105_s2] sm:$0xf] }
  0x37   :  { %v77_v1 = vld [vmem:[%s1103_s0] sm:$0xff]  ;;  %v78_v2 = vld [vmem:[%s1103_s0 + $0x8] sm:$0xff]  ;;  %640 = vmatprep.subr.msk.mxu1 %vm94_vm0, %v79_v0  ;;  %v178_v7 = vld [vmem:[#allocation3 + $0x18] sm:$0xff]  ;;  %vm958_vm2 = vmmov 0   ;;  %vm382_vm3 = vcmask 130048   ;;  %s959_s14 = smov [#allocation9]  }
  0x38   :  { %642 = vmatprep.mubr.msk.f32.mxu1 %vm87_vm1, %v77_v1  ;;  %v175_v3 = vld [vmem:[#allocation3] sm:$0xff]  ;;  %v176_v4 = vld [vmem:[#allocation3 + $0x8] sm:$0xff]  ;;  %v177_v5 = vld [vmem:[#allocation3 + $0x10] sm:$0xff]  ;;  %641 = vmatpush3.msk.msra.mxu1 %vm94_vm0, %v79_v0  ;;  %v956_v1 = vmov 0.0|0.0   ;;  %s563_s19 = sshll.u32 %s959_s14, 4  ;;  %s564_s19 = int_to_ptr.vmem [resolvable:$true] %s563_s19 }
  0x39   :  { %v757_v6 = vpack.c.bf16 %v176_v4, %v175_v3  ;;  %643 = vmatmul.mubr.msk.f32.vlgmr.msra.gmra.mrb[0].mxu1 %vm87_vm1, %v78_v2  ;;  %v761_v8 = vpack.c.bf16 %v178_v7, %v177_v5  ;;  %v179_v9 = vld [vmem:[#allocation3 + $0x20] sm:$0xff]  ;;  %v180_v10 = vld [vmem:[#allocation3 + $0x28] sm:$0xff]  ;;  %v181_v12 = vld [vmem:[#allocation3 + $0x30] sm:$0xff]  ;;  %v957_v2 = vmov 0.0   ;;  %s923_s20 = scalar_lea.vmem %s564_s19, 32  ;;  %p928_p11 = scmp.lt.s32.totalorder %s564_s19, %s564_s19 }
  0x3a   :  { %v765_v11 = vpack.c.bf16 %v180_v10, %v179_v9  ;;  %v182_v13 = vld [vmem:[#allocation3 + $0x38] sm:$0xff]  ;;  %v183_v15 = vld [vmem:[#allocation3 + $0x40] sm:$0xff]  ;;  %v184_v16 = vld [vmem:[#allocation3 + $0x48] sm:$0xff]  ;;  %379 = vst [vmem:[#allocation2] sm:$0x3] %v957_v2  ;;  %p924_p10 = scmp.ne.s32.totalorder %s564_s19, %s923_s20  ;;  %p929_p12 = scmp.lt.s32.totalorder %s923_s20, %s923_s20 }
  0x3b   :  { %758 = vmatprep.subr.bf16.mxu1 %v757_v6  ;;  %v769_v14 = vpack.c.bf16 %v182_v13, %v181_v12  ;;  %v773_v17 = vpack.c.bf16 %v184_v16, %v183_v15  ;;  %v185_v18 = vld [vmem:[#allocation3 + $0x50] sm:$0xff]  ;;  %v186_v19 = vld [vmem:[#allocation3 + $0x58] sm:$0xff]  ;;  %v187_v21 = vld [vmem:[#allocation3 + $0x60] sm:$0xff] }
  0x3c   :  { %760 = vmatpush3.bf16.msra.mxu1 %v757_v6  ;;  %v777_v20 = vpack.c.bf16 %v186_v19, %v185_v18  ;;  %v188_v22 = vld [vmem:[#allocation3 + $0x68] sm:$0xff]  ;;  %v189_v24 = vld [vmem:[#allocation3 + $0x70] sm:$0xff]  ;;  %v190_v25 = vld [vmem:[#allocation3 + $0x78] sm:$0xff]  ;;  %p930_p13 = por %p929_p12, %p928_p11 }
  0x3d   :  { %762 = vmatprep.subr.bf16.mxu1 %v761_v8  ;;  %v781_v23 = vpack.c.bf16 %v188_v22, %v187_v21  ;;  %v785_v26 = vpack.c.bf16 %v190_v25, %v189_v24  ;;  %v275_v27 = vld [vmem:[#allocation6] sm:$0xff]  ;;  %v276_v28 = vld [vmem:[#allocation6 + $0x8] sm:$0xff]  ;;  %v277_v29 = vld [vmem:[#allocation6 + $0x10] sm:$0xff] }
  0x3e   :  { %v789_v30 = vpack.c.bf16 %v276_v28, %v275_v27  ;;  %v278_v31 = vld [vmem:[#allocation6 + $0x18] sm:$0xff]  ;;  %v279_v33 = vld [vmem:[#allocation6 + $0x20] sm:$0xff]  ;;  %v280_v34 = vld [vmem:[#allocation6 + $0x28] sm:$0xff]  ;;  %p931_p0 = pnand %p930_p13, %p924_p10 }
  0x3f   :  { %v793_v32 = vpack.c.bf16 %v278_v31, %v277_v29  ;;  %v797_v35 = vpack.c.bf16 %v280_v34, %v279_v33  ;;  %v281_v36 = vld [vmem:[#allocation6 + $0x30] sm:$0xff]  ;;  %v282_v37 = vld [vmem:[#allocation6 + $0x38] sm:$0xff]  ;;  %v283_v39 = vld [vmem:[#allocation6 + $0x40] sm:$0xff] }
  0x40   :  { %764 = vmatpush3.bf16.msra.mxu1 %v761_v8  ;;  %790 = vmatprep.subr.bf16.mxu0 %v789_v30  ;;  %v801_v38 = vpack.c.bf16 %v282_v37, %v281_v36  ;;  %v284_v40 = vld [vmem:[#allocation6 + $0x48] sm:$0xff]  ;;  %v285_v42 = vld [vmem:[#allocation6 + $0x50] sm:$0xff]  ;;  %v286_v43 = vld [vmem:[#allocation6 + $0x58] sm:$0xff] }
  0x41   :  { %766 = vmatprep.subr.bf16.mxu1 %v765_v11  ;;  %792 = vmatpush3.bf16.msra.mxu0 %v789_v30  ;;  %v805_v41 = vpack.c.bf16 %v284_v40, %v283_v39  ;;  %v809_v44 = vpack.c.bf16 %v286_v43, %v285_v42  ;;  %v287_v45 = vld [vmem:[#allocation6 + $0x60] sm:$0xff]  ;;  %v288_v46 = vld [vmem:[#allocation6 + $0x68] sm:$0xff]  ;;  %v289_v55 = vld [vmem:[#allocation6 + $0x70] sm:$0xff] }
  0x42   :  { %794 = vmatprep.subr.bf16.mxu0 %v793_v32  ;;  %v813_v47 = vpack.c.bf16 %v288_v46, %v287_v45  ;;  %v573_v48 = vld [vmem:[%s1106_s3] ss:$0 sm:$0xff]  ;;  %v290_v56 = vld [vmem:[#allocation6 + $0x78] sm:$0xff]  ;;  %v464_v4 = vld [vmem:[#allocation8 + $0x8] sm:$0xff] }
  0x43   :  { %v817_v57 = vpack.c.bf16 %v290_v56, %v289_v55  ;;  %v577_v58 = vld [vmem:[%s1108_s5] ss:$0 sm:$0xff]  ;;  %v465_v5 = vld [vmem:[#allocation8 + $0x10] sm:$0xff]  ;;  %v466_v7 = vld [vmem:[#allocation8 + $0x18] sm:$0xff] }
  0x44   :  { %768 = vmatpush3.bf16.msra.mxu1 %v765_v11  ;;  %v463_v3 = vld [vmem:[#allocation8] sm:$0xff]  ;;  %v828_v8 = vpack.c.bf16 %v466_v7, %v465_v5  ;;  %v468_v10 = vld [vmem:[#allocation8 + $0x28] sm:$0xff]  ;;  %v469_v12 = vld [vmem:[#allocation8 + $0x30] sm:$0xff] }
  0x45   :  { %770 = vmatprep.subr.bf16.mxu1 %v769_v14  ;;  %796 = vmatpush3.bf16.msra.mxu0 %v793_v32  ;;  %v825_v6 = vpack.c.bf16 %v464_v4, %v463_v3  ;;  %v467_v9 = vld [vmem:[#allocation8 + $0x20] sm:$0xff]  ;;  %v470_v13 = vld [vmem:[#allocation8 + $0x38] sm:$0xff]  ;;  %v472_v16 = vld [vmem:[#allocation8 + $0x48] sm:$0xff] }
  0x46   :  { %798 = vmatprep.subr.bf16.mxu0 %v797_v35  ;;  %v831_v11 = vpack.c.bf16 %v468_v10, %v467_v9  ;;  %v471_v15 = vld [vmem:[#allocation8 + $0x40] sm:$0xff]  ;;  %v473_v27 = vld [vmem:[#allocation8 + $0x50] sm:$0xff]  ;;  %v474_v28 = vld [vmem:[#allocation8 + $0x58] sm:$0xff] }
  0x47   :  { %v578_v18 = vld [vmem:[%s1110_s7] ss:$0 sm:$0xff]  ;;  %v840_v29 = vpack.c.bf16 %v474_v28, %v473_v27  ;;  %v476_v31 = vld [vmem:[#allocation8 + $0x68] sm:$0xff]  ;;  %v477_v32 = vld [vmem:[#allocation8 + $0x70] sm:$0xff] }
  0x48   :  { %772 = vmatpush3.bf16.msra.mxu1 %v769_v14  ;;  %v834_v14 = vpack.c.bf16 %v470_v13, %v469_v12  ;;  %v475_v30 = vld [vmem:[#allocation8 + $0x60] sm:$0xff]  ;;  %v478_v34 = vld [vmem:[#allocation8 + $0x78] sm:$0xff] }
  0x49   :  { %774 = vmatprep.subr.bf16.mxu1 %v773_v17  ;;  %800 = vmatpush3.bf16.msra.mxu0 %v797_v35  ;;  %v843_v33 = vpack.c.bf16 %v476_v31, %v475_v30  ;;  %v846_v35 = vpack.c.bf16 %v478_v34, %v477_v32  ;;  %v380_v36 = vld [vmem:[#allocation2] sm:$0x3]  ;;  %v580_v42 = vld [vmem:[%s1112_s9] ss:$0 sm:$0xff] }
  0x4a   :  { %802 = vmatprep.subr.bf16.mxu0 %v801_v38 }
  0x4c   :  { %776 = vmatpush3.bf16.msra.mxu1 %v773_v17  ;;  %v837_v17 = vpack.c.bf16 %v472_v16, %v471_v15 }
  0x4d   :  { %778 = vmatprep.subr.bf16.mxu1 %v777_v20  ;;  %804 = vmatpush3.bf16.msra.mxu0 %v801_v38 }
  0x4e   :  { %806 = vmatprep.subr.bf16.mxu0 %v805_v41 }
  0x50   :  { %780 = vmatpush3.bf16.msra.mxu1 %v777_v20 }
  0x51   :  { %782 = vmatprep.subr.bf16.mxu1 %v781_v23  ;;  %808 = vmatpush3.bf16.msra.mxu0 %v805_v41 }
  0x52   :  { %810 = vmatprep.subr.bf16.mxu0 %v809_v44 }
  0x54   :  { %784 = vmatpush3.bf16.msra.mxu1 %v781_v23 }
  0x55   :  { %786 = vmatprep.subr.bf16.mxu1 %v785_v26  ;;  %812 = vmatpush3.bf16.msra.mxu0 %v809_v44 }
  0x56   :  { %814 = vmatprep.subr.bf16.mxu0 %v813_v47 }
  0x58   :  { %788 = vmatpush3.bf16.msra.mxu1 %v785_v26  ;;  %v381_v26 = vld [vmem:[%s1104_s1] sm:$0x3] }
  0x59   :  { %816 = vmatpush3.bf16.msra.mxu0 %v813_v47  ;;  %821 = vmatprep.subr.bf16.mxu1 %v956_v1 }
  0x5a   :  { %818 = vmatprep.subr.bf16.mxu0 %v817_v57 }
  0x5d   :  { %820 = vmatpush3.bf16.msra.mxu0 %v817_v57 }
  0x5e   :  { %824 = vmatprep.subr.bf16.mxu0 %v956_v1 }
 0x10c   :  { %v644_v49 = vpop.f32.mrb[0].mxu1 }
 0x10d   :  { %v170_v50 = vadd.f32 %v644_v49, %v573_v48  ;;  %v164_v51 = vpop.f32.mrb[1].mxu1 }
 0x10e   :  { %v165_v52 = vadd.f32 %v573_v48, %v164_v51 }
 0x10f   :  { %v174_v54 = vmax.f32 %v170_v50, 0.0 }
 0x110   :  { %v173_v53 = vmax.f32 %v165_v52, 0.0 }
 0x112   :  { %677 = vmatprep.mubr.f32.mxu1 %v173_v53 }
 0x113   :  { %678 = vmatmul.mubr.f32.vlgmr.msra.gmra.mrb[2].mxu1 %v174_v54 }
 0x114   :  { %719 = vmatprep.mubr.msk.f32.mxu1 %vm958_vm2, %v957_v2 }
 0x1e6   :  { %v679_v59 = vpop.f32.mrb[2].mxu1 }
 0x1e7   :  { %v270_v60 = vadd.f32 %v679_v59, %v577_v58  ;;  %v264_v61 = vpop.f32.mrb[3].mxu1 }
 0x1e8   :  { %v265_v62 = vadd.f32 %v577_v58, %v264_v61 }
 0x1e9   :  { %v274_v0 = vmax.f32 %v270_v60, 0.0 }
 0x1ea   :  { %v273_v63 = vmax.f32 %v265_v62, 0.0 }
 0x1ec   :  { %712 = vmatprep.mubr.f32.mxu0 %v273_v63 }
 0x1ed   :  { %713 = vmatmul.mubr.f32.vlgmr.msra.gmra.mrb[0].mxu0 %v274_v0 }
 0x1ee   :  { %754 = vmatprep.mubr.msk.f32.mxu0 %vm958_vm2, %v957_v2  ;;  %826 = vmatpush3.bf16.msra.mxu0 %v825_v6 }
 0x1ef   :  { %827 = vmatprep.subr.bf16.mxu0 %v956_v1 }
 0x1f2   :  { %829 = vmatpush3.bf16.msra.mxu0 %v828_v8 }
 0x1f3   :  { %830 = vmatprep.subr.bf16.mxu0 %v956_v1 }
 0x1f6   :  { %832 = vmatpush3.bf16.msra.mxu0 %v831_v11 }
 0x1f7   :  { %833 = vmatprep.subr.bf16.mxu0 %v956_v1 }
 0x1fa   :  { %835 = vmatpush3.bf16.msra.mxu0 %v834_v14 }
 0x1fb   :  { %836 = vmatprep.subr.bf16.mxu0 %v956_v1 }
 0x1fe   :  { %838 = vmatpush3.bf16.msra.mxu0 %v837_v17 }
 0x1ff   :  { %839 = vmatprep.subr.bf16.mxu0 %v956_v1 }
 0x202   :  { %841 = vmatpush3.bf16.msra.mxu0 %v840_v29 }
 0x203   :  { %842 = vmatprep.subr.bf16.mxu0 %v956_v1 }
 0x206   :  { %844 = vmatpush3.bf16.msra.mxu0 %v843_v33 }
 0x207   :  { %845 = vmatprep.subr.bf16.mxu0 %v956_v1 }
 0x20a   :  { %847 = vmatpush3.bf16.msra.mxu0 %v846_v35 }
 0x2c0   :  { %v714_v19 = vpop.f32.mrb[0].mxu0 }
 0x2c1   :  { %v370_v20 = vadd.f32 %v714_v19, %v578_v18  ;;  %v364_v21 = vpop.f32.mrb[1].mxu0 }
 0x2c2   :  { %v365_v22 = vadd.f32 %v578_v18, %v364_v21 }
 0x2c3   :  { %v374_v23 = vmax.f32 %v370_v20, 0.0 }
 0x2c4   :  { %v373_v24 = vmax.f32 %v365_v22, 0.0 }
 0x2c6   :  { %v822_v25 = vpack.c.bf16 %v374_v23, %v373_v24 }
 0x2c8   :  { %823 = vmatpush3.bf16.msra.mxu1 %v822_v25 }
 0x2cb   :  { %720 = vmatmul.mubr.msk.f32.vlgmr.msra.gmra.mrb[4].mxu1 %vm382_vm3, %v381_v26 }
 0x39e   :  { %v452_v37 = vpop.f32.mrb[4].mxu1 }
 0x39f   :  { %v456_v38 = vadd.f32 %v452_v37, %v380_v36  ;;  %v721_v39 = vpop.f32.mrb[5].mxu1 }
 0x3a1   :  { %457 = vst [vmem:[#allocation2] sm:$0x3] %v456_v38 }
 0x3a8   :  { %v461_v40 = vld [vmem:[#allocation2] sm:$0x3] }
 0x3a9   :  { %v462_v41 = vmul.f32 0.125, %v461_v40 }
 0x3ab   :  { %755 = vmatmul.mubr.f32.vlgmr.msra.gmra.mrb[2].mxu0 %v462_v41 }
 0x47e   :  { %v552_v43 = vpop.f32.mrb[2].mxu0 }
 0x47f   :  { %v553_v44 = vadd.f32 %v580_v42, %v552_v43  ;;  %v756_v45 = vpop.f32.mrb[3].mxu0 }
 0x481   :  { %556 = vst [vmem:[#allocation9] sm:$0x3] %v553_v44 }
 0x482   :  { %934 = shalt.err (!%p931_p0)
}
 0x483   :  { %s935_s23 = scalar_lea.hbm %s1113_s10, 32 }
 0x484   :  { %p936_p1 = scmp.ne.s32.totalorder %s1113_s10, %s935_s23  ;;  %p939_p2 = scmp.lt.u32.totalorder %s935_s23, %s1113_s10 }
 0x486   :  { %p941_p3 = pnand %p939_p2, %p936_p1 }
 0x488   :  { %944 = shalt.err (!%p941_p3)
}
 0x489   :  { %566 = dma.vmem_to_hbm [thread:$0]  %s564_s19, 32, %s1113_s10, [#allocation5]  }
 0x48a   :  { %949 = dma.done.wait [#allocation5], 32  }
 0x48b   :  { %950 = vsyncadd [#allocation5], 4294967264 }
 0x48c   :  { %570 = vsyncpa [#allocation4], 1 }
 0x48d   :  { %571 = vsyncpa [#allocation7], 1 }
 0x48e   :  { %572 = vsyncpa [#allocation5], 1 }

</bundles_post_ra>
